<compile_context>
chip_gen: v6e
topology: v6e:2x2x1
jax: 0.10.0
libtpu: 0.0.40
codegen_flags: <defaults>
</compile_context>

<pallas_src>
import jax
import jax.numpy as jnp
from jax.experimental import pallas as pl
from jax.experimental.pallas import tpu as pltpu

NODE_NUM = 231
IN_FEATURES = 2
FLAT = NODE_NUM * IN_FEATURES          # 462 = per-mode flattened feature width
K = 100                                # columns per parameter tensor
K_PAD = 128                            # padded to a full lane tile
KP2 = 2 * K_PAD                        # 256 fused output lanes
ACTION_SIZE = 2
DEFAULT_TILE_B = 512                   # >=512 rows amortizes grid-step overhead
                                       # and stays well under v5e's 16 MiB scoped VMEM


def qnetwork_kernel(bike_ref, taxi_ref, cache_ref, wb_ref, wt_ref, aux_ref,
                    out_ref):
    """One batch tile.

    bike_ref : (TB, 462)  bf16   bike_node.reshape(B,-1) tile
    taxi_ref : (TB, 462)  bf16   taxi_node.reshape(B,-1) tile
    cache_ref: (TB, 1, H, W) f32 cache channel 1 only (selected by BlockSpec)
    wb_ref   : (462, 256) bf16   -2 * fused [t0|t1] params, bike-ordered rows
    wt_ref   : (462, 256) bf16   -2 * fused [t0|t1] params, taxi-ordered rows
    aux_ref  : (2, 256)   f32    row 0: ||t_col||^2 (0 on pads); row 1: pad mask
    out_ref  : (TB, 2)    f32    Q output tile
    """
    bike16 = bike_ref[...]
    taxi16 = taxi_ref[...]
    bike = bike16.astype(jnp.float32)
    taxi = taxi16.astype(jnp.float32)

    # ||node||^2 per row, f32, computed from the same bf16-rounded activations
    # that feed the MXU (keeps the distance expansion self-consistent).
    node_sq = (jnp.sum(bike * bike, axis=1, keepdims=True)
               + jnp.sum(taxi * taxi, axis=1, keepdims=True))         # (TB,1)

    # One fused MXU pass over both parameter tensors; the -2 scale is already
    # folded into wb/wt, so this term is  -2 * node . t_col.
    cross = (jnp.dot(bike16, wb_ref[...], preferred_element_type=jnp.float32)
             + jnp.dot(taxi16, wt_ref[...], preferred_element_type=jnp.float32))

    tsq = aux_ref[0:1, :]                                              # (1,256)
    pad_mask = aux_ref[1:2, :]                                         # (1,256)

    # ||a - t||^2 = ||a||^2 + ||t||^2 - 2 a.t  (clamped against cancellation).
    sq = jnp.maximum(node_sq + tsq + cross, 0.0)                       # (TB,256)
    d = jnp.sqrt(sq) * pad_mask                                        # zero pads

    # torch: sum over the K columns of each tensor's per-column distances.
    dis1 = jnp.sum(d[:, :K_PAD], axis=1, keepdims=True)                # (TB,1)
    dis2 = jnp.sum(d[:, K_PAD:], axis=1, keepdims=True)                # (TB,1)

    # q = [dis1, dis2] / (dis1 + dis2)   (sum normalization, no zero guard,
    # matching the PyTorch original).  EUP approximate reciprocal = free slot.
    inv = pl.reciprocal(dis1 + dis2, approx=True)

    # cache_empty_mask = all(cache[:, 1] == 0) per batch row.
    c1 = cache_ref[:, 0, :, :]                                         # (TB,H,W)
    nz = jnp.max(jnp.abs(c1), axis=2)                                  # (TB,H)
    nz = jnp.max(nz, axis=1, keepdims=True)                            # (TB,1)
    empty = nz == 0.0

    # specified_output = mean(q) == 0.5 exactly for a 2-vector normalized by
    # its own sum; write the two output columns directly (no 1-lane concat).
    out_ref[:, 0:1] = jnp.where(empty, 0.5, dis1 * inv)
    out_ref[:, 1:2] = jnp.where(empty, 0.5, dis2 * inv)


def prepare_qnetwork_params(tensor0, tensor1):
    """One-time offline parameter prep.

    Fuses tensor0/tensor1 along K (100 -> 128 padded each, 256 total lanes),
    bf16-rounds once, folds the -2 distance-expansion scale into the weights
    (exact power of two in bf16), permutes the 924 rows into the
    [bike-order | taxi-order] halves matching the split contraction, and packs
    per-column ||t||^2 plus the pad-column mask into a tiny (2, 256) aux array.
    """
    def pad_k(t):                                  # (924, 100) -> (924, 128)
        return jnp.pad(t, ((0, 0), (0, K_PAD - K)))

    fused = jnp.concatenate([pad_k(tensor0), pad_k(tensor1)], axis=1)   # (924,256)
    fused32 = fused.astype(jnp.bfloat16).astype(jnp.float32)            # MXU values

    t_sq = jnp.sum(fused32 * fused32, axis=0)                           # (256,)
    pad_mask = (jnp.arange(KP2) % K_PAD < K).astype(jnp.float32)        # (256,)
    aux = jnp.stack([t_sq, pad_mask], axis=0)                           # (2,256) f32

    w = (-2.0 * fused32).astype(jnp.bfloat16)                           # exact scale
    # Original row index j = 4*n + c with c in {bike0, bike1, taxi0, taxi1}.
    w = w.reshape(NODE_NUM, 4, KP2)
    w_bike = w[:, 0:2, :].reshape(FLAT, KP2)                            # (462,256)
    w_taxi = w[:, 2:4, :].reshape(FLAT, KP2)                            # (462,256)
    return w_bike, w_taxi, aux


def qnetwork_forward(bike_node, taxi_node, cache, w_bike, w_taxi, aux, *,
                     tile_b=DEFAULT_TILE_B):
    """QNetwork.forward. bike_node/taxi_node: (B, 231, 2); cache: (B, 2, H, W)."""
    B = bike_node.shape[0]
    H, W = cache.shape[2], cache.shape[3]

    # Contiguous reshapes are free; the bf16 cast halves kernel-side activation
    # HBM traffic (keep activations bf16 upstream to make it a no-op).
    bike_flat = bike_node.reshape(B, FLAT).astype(jnp.bfloat16)
    taxi_flat = taxi_node.reshape(B, FLAT).astype(jnp.bfloat16)

    # Single full block for small B; otherwise 8-aligned batch tiles (partial
    # last tile is handled by Pallas OOB masking; rows are independent).
    tb = B if B <= tile_b else tile_b
    assert B <= tile_b or tb % 8 == 0, "tile_b must be a multiple of 8"
    grid = (pl.cdiv(B, tb),)

    grid_spec = pltpu.PrefetchScalarGridSpec(
        num_scalar_prefetch=0,
        grid=grid,
        in_specs=[
            pl.BlockSpec((tb, FLAT), lambda i: (i, 0)),
            pl.BlockSpec((tb, FLAT), lambda i: (i, 0)),
            # Cache: DMA channel 1 only (block index 1 on the channel dim).
            pl.BlockSpec((tb, 1, H, W), lambda i: (i, 1, 0, 0)),
            # Parameters / aux: constant block index -> VMEM-resident across tiles.
            pl.BlockSpec((FLAT, KP2), lambda i: (0, 0)),
            pl.BlockSpec((FLAT, KP2), lambda i: (0, 0)),
            pl.BlockSpec((2, KP2), lambda i: (0, 0)),
        ],
        out_specs=pl.BlockSpec((tb, ACTION_SIZE), lambda i: (i, 0)),
    )

    flops = 2 * B * FLAT * KP2 * 2                 # two half-contractions
    bytes_accessed = (2 * FLAT * KP2 * 2           # bf16 parameter slabs (once)
                      + 2 * KP2 * 4                # aux
                      + 2 * B * FLAT * 2           # bf16 activations
                      + B * H * W * 4              # cache channel 1 only
                      + B * ACTION_SIZE * 4)       # output

    return pl.pallas_call(
        qnetwork_kernel,
        out_shape=jax.ShapeDtypeStruct((B, ACTION_SIZE), jnp.float32),
        grid_spec=grid_spec,
        compiler_params=pltpu.CompilerParams(
            dimension_semantics=("parallel",)),    # v7x: both TCs split the batch
        cost_estimate=pl.CostEstimate(
            flops=flops,
            transcendentals=B * (KP2 + 1),         # sqrt's + reciprocal
            bytes_accessed=bytes_accessed),
    )(bike_flat, taxi_flat, cache, w_bike, w_taxi, aux)


def qnetwork_reference(bike_node, taxi_node, cache, tensor0, tensor1):
    """Plain-JAX reference mirroring the PyTorch forward (for verification)."""
    B = bike_node.shape[0]
    cache1 = cache[:, 1, :, :].reshape(B, -1)
    cache_empty_mask = jnp.all(cache1 == 0, axis=1)
    node = jnp.concatenate([bike_node, taxi_node], axis=-1).reshape(B, -1)

    diff1 = node[:, :, None] - tensor0[None, :, :]           # (B, 924, 100)
    diff2 = node[:, :, None] - tensor1[None, :, :]
    dis1 = jnp.sum(jnp.linalg.norm(diff1, axis=1), axis=1)   # (B,)
    dis2 = jnp.sum(jnp.linalg.norm(diff2, axis=1), axis=1)
    q = jnp.stack([dis1, dis2], axis=1)
    q = q / jnp.sum(q, axis=1, keepdims=True)
    spec = jnp.broadcast_to(jnp.mean(q, axis=-1, keepdims=True), q.shape)
    return jnp.where(cache_empty_mask[:, None], spec, q)


if __name__ == "__main__":
    key = jax.random.PRNGKey(0)
    k_a, k_b, k_t0, k_t1 = jax.random.split(key, 4)

    H, W = 8, 4

    # Module shapes: nn.Parameter(torch.zeros(231*4, 100) * 0.001).  Use
    # non-trivial values (tensor1 offset) so the distance math is exercised.
    tensor0 = 0.3 * jax.random.normal(k_t0, (NODE_NUM * 4, K), jnp.float32)
    tensor1 = 0.3 * jax.random.normal(k_t1, (NODE_NUM * 4, K), jnp.float32) + 0.5
    w_bike, w_taxi, aux = prepare_qnetwork_params(tensor0, tensor1)

    fwd = jax.jit(qnetwork_forward, static_argnames=("tile_b",))

    def run_case(B, tile_b, case_key, empty_rows):
        kb, kt, kc = jax.random.split(case_key, 3)
        bike_node = jax.random.normal(kb, (B, NODE_NUM, IN_FEATURES), jnp.float32)
        taxi_node = jax.random.normal(kt, (B, NODE_NUM, IN_FEATURES), jnp.float32)
        cache = jax.random.normal(kc, (B, 2, H, W), jnp.float32)
        for r in empty_rows:   # make some rows hit the empty-cache branch
            cache = cache.at[r, 1, :, :].set(0.0)

        out = jax.block_until_ready(
            fwd(bike_node, taxi_node, cache, w_bike, w_taxi, aux, tile_b=tile_b))
        ref = qnetwork_reference(bike_node, taxi_node, cache, tensor0, tensor1)
        assert out.shape == (B, ACTION_SIZE)
        # Relaxed tolerance: bf16 params + bf16 activations + approx reciprocal.
        assert jnp.allclose(out, ref, rtol=2e-3, atol=2e-3), (out, ref)

    # Small canonical case: B=2, single (full-array) block, grid=(1,).
    run_case(2, DEFAULT_TILE_B, k_a, empty_rows=(0,))
    # Multi-tile case with a partial last tile: exercises the batch grid,
    # resident-parameter revisiting and OOB masking on the final block.
    run_case(200, 64, k_b, empty_rows=(0, 137))

    print("KERNEL_OK")
</pallas_src>

<mosaic_0001>
module attributes {stable_mosaic.version = 11 : i64} {
  func.func @qnetwork_kernel(%arg0: i32, %arg1: memref<2x462xbf16, #tpu.memory_space<vmem>>, %arg2: memref<2x462xbf16, #tpu.memory_space<vmem>>, %arg3: memref<2x1x8x4xf32, #tpu.memory_space<vmem>>, %arg4: memref<462x256xbf16, #tpu.memory_space<vmem>>, %arg5: memref<462x256xbf16, #tpu.memory_space<vmem>>, %arg6: memref<2x256xf32, #tpu.memory_space<vmem>>, %arg7: memref<2x2xf32, #tpu.memory_space<vmem>>) attributes {dimension_semantics = [#tpu.dimension_semantics<parallel>], iteration_bounds = array<i64: 1>, scalar_prefetch = 0 : i64, scratch_operands = 0 : i64, tpu.core_type = #tpu.core_type<tc>, window_params = [{transform_indices = @transform_0, window_bounds = array<i64: 2, 462>}, {transform_indices = @transform_1, window_bounds = array<i64: 2, 462>}, {transform_indices = @transform_2, window_bounds = array<i64: 2, 1, 8, 4>}, {pipeline_mode = #tpu.pipeline_mode<synchronous>, transform_indices = @transform_3, window_bounds = array<i64: 462, 256>}, {pipeline_mode = #tpu.pipeline_mode<synchronous>, transform_indices = @transform_4, window_bounds = array<i64: 462, 256>}, {pipeline_mode = #tpu.pipeline_mode<synchronous>, transform_indices = @transform_5, window_bounds = array<i64: 2, 256>}, {transform_indices = @transform_6, window_bounds = array<i64: 2, 2>}]} {
    %c0 = arith.constant 0 : index
    %c0_0 = arith.constant 0 : index
    %0 = vector.load %arg1[%c0, %c0_0] : memref<2x462xbf16, #tpu.memory_space<vmem>>, vector<2x462xbf16>
    %c0_1 = arith.constant 0 : index
    %c0_2 = arith.constant 0 : index
    %1 = vector.load %arg2[%c0_1, %c0_2] : memref<2x462xbf16, #tpu.memory_space<vmem>>, vector<2x462xbf16>
    %2 = arith.extf %0 : vector<2x462xbf16> to vector<2x462xf32>
    %3 = arith.extf %1 : vector<2x462xbf16> to vector<2x462xf32>
    %4 = arith.mulf %2, %2 : vector<2x462xf32>
    %cst = arith.constant dense<0.000000e+00> : vector<2xf32>
    %5 = vector.multi_reduction <add>, %4, %cst [1] : vector<2x462xf32> to vector<2xf32>
    %6 = vector.shape_cast %5 : vector<2xf32> to vector<2x1xf32>
    %7 = arith.mulf %3, %3 : vector<2x462xf32>
    %cst_3 = arith.constant dense<0.000000e+00> : vector<2xf32>
    %8 = vector.multi_reduction <add>, %7, %cst_3 [1] : vector<2x462xf32> to vector<2xf32>
    %9 = vector.shape_cast %8 : vector<2xf32> to vector<2x1xf32>
    %10 = arith.addf %6, %9 : vector<2x1xf32>
    %c0_4 = arith.constant 0 : index
    %c0_5 = arith.constant 0 : index
    %11 = vector.load %arg4[%c0_4, %c0_5] : memref<462x256xbf16, #tpu.memory_space<vmem>>, vector<462x256xbf16>
    %cst_6 = arith.constant dense<0.000000e+00> : vector<2x256xf32>
    %12 = tpu.matmul %0, %11, %cst_6 {dimension_numbers = #tpu.dot_dimension_numbers<[1], [0], [0], [1], [0, 0, 1, 1], [], []>} : vector<2x462xbf16>, vector<462x256xbf16>, vector<2x256xf32> -> vector<2x256xf32>
    %c0_7 = arith.constant 0 : index
    %c0_8 = arith.constant 0 : index
    %13 = vector.load %arg5[%c0_7, %c0_8] : memref<462x256xbf16, #tpu.memory_space<vmem>>, vector<462x256xbf16>
    %cst_9 = arith.constant dense<0.000000e+00> : vector<2x256xf32>
    %14 = tpu.matmul %1, %13, %cst_9 {dimension_numbers = #tpu.dot_dimension_numbers<[1], [0], [0], [1], [0, 0, 1, 1], [], []>} : vector<2x462xbf16>, vector<462x256xbf16>, vector<2x256xf32> -> vector<2x256xf32>
    %15 = arith.addf %12, %14 : vector<2x256xf32>
    %c0_10 = arith.constant 0 : index
    %c0_11 = arith.constant 0 : index
    %16 = vector.load %arg6[%c0_10, %c0_11] : memref<2x256xf32, #tpu.memory_space<vmem>>, vector<1x256xf32>
    %c1 = arith.constant 1 : index
    %c0_12 = arith.constant 0 : index
    %17 = vector.load %arg6[%c1, %c0_12] : memref<2x256xf32, #tpu.memory_space<vmem>>, vector<1x256xf32>
    %18 = vector.broadcast %10 : vector<2x1xf32> to vector<2x256xf32>
    %19 = vector.broadcast %16 : vector<1x256xf32> to vector<2x256xf32>
    %20 = arith.addf %18, %19 : vector<2x256xf32>
    %21 = arith.addf %20, %15 : vector<2x256xf32>
    %cst_13 = arith.constant 0.000000e+00 : f32
    %22 = vector.broadcast %cst_13 : f32 to vector<2x256xf32>
    %23 = arith.maximumf %21, %22 : vector<2x256xf32>
    %24 = math.sqrt %23 : vector<2x256xf32>
    %25 = vector.broadcast %17 : vector<1x256xf32> to vector<2x256xf32>
    %26 = arith.mulf %24, %25 : vector<2x256xf32>
    %27 = vector.extract_strided_slice %26 {offsets = [0, 0], sizes = [2, 128], strides = [1, 1]} : vector<2x256xf32> to vector<2x128xf32>
    %cst_14 = arith.constant dense<0.000000e+00> : vector<2xf32>
    %28 = vector.multi_reduction <add>, %27, %cst_14 [1] : vector<2x128xf32> to vector<2xf32>
    %29 = vector.shape_cast %28 : vector<2xf32> to vector<2x1xf32>
    %30 = vector.extract_strided_slice %26 {offsets = [0, 128], sizes = [2, 128], strides = [1, 1]} : vector<2x256xf32> to vector<2x128xf32>
    %cst_15 = arith.constant dense<0.000000e+00> : vector<2xf32>
    %31 = vector.multi_reduction <add>, %30, %cst_15 [1] : vector<2x128xf32> to vector<2xf32>
    %32 = vector.shape_cast %31 : vector<2xf32> to vector<2x1xf32>
    %33 = arith.addf %29, %32 : vector<2x1xf32>
    %34 = tpu.reciprocal %33 {approx = true} : vector<2x1xf32> -> vector<2x1xf32>
    %c0_16 = arith.constant 0 : index
    %c0_17 = arith.constant 0 : index
    %c0_18 = arith.constant 0 : index
    %c0_19 = arith.constant 0 : index
    %35 = vector.load %arg3[%c0_16, %c0_17, %c0_18, %c0_19] : memref<2x1x8x4xf32, #tpu.memory_space<vmem>>, vector<2x1x8x4xf32>
    %36 = vector.shape_cast %35 : vector<2x1x8x4xf32> to vector<2x8x4xf32>
    %37 = math.absf %36 : vector<2x8x4xf32>
    %cst_20 = arith.constant dense<0xFF800000> : vector<2x8xf32>
    %38 = vector.multi_reduction <maximumf>, %37, %cst_20 [2] : vector<2x8x4xf32> to vector<2x8xf32>
    %cst_21 = arith.constant dense<0xFF800000> : vector<2xf32>
    %39 = vector.multi_reduction <maximumf>, %38, %cst_21 [1] : vector<2x8xf32> to vector<2xf32>
    %40 = vector.shape_cast %39 : vector<2xf32> to vector<2x1xf32>
    %cst_22 = arith.constant 0.000000e+00 : f32
    %41 = vector.broadcast %cst_22 : f32 to vector<2x1xf32>
    %42 = arith.cmpf oeq, %40, %41 : vector<2x1xf32>
    %43 = arith.mulf %29, %34 : vector<2x1xf32>
    %cst_23 = arith.constant 5.000000e-01 : f32
    %44 = vector.broadcast %cst_23 : f32 to vector<2x1xf32>
    %45 = arith.select %42, %44, %43 : vector<2x1xi1>, vector<2x1xf32>
    %c0_24 = arith.constant 0 : index
    %c0_25 = arith.constant 0 : index
    %46 = vector.load %arg7[%c0_24, %c0_25] : memref<2x2xf32, #tpu.memory_space<vmem>>, vector<2x1xf32>
    tpu.vector_store %arg7[%c0_24, %c0_25], %45 {strides = array<i32>} : memref<2x2xf32, #tpu.memory_space<vmem>>, vector<2x1xf32>,
    %47 = arith.mulf %32, %34 : vector<2x1xf32>
    %cst_26 = arith.constant 5.000000e-01 : f32
    %48 = vector.broadcast %cst_26 : f32 to vector<2x1xf32>
    %49 = arith.select %42, %48, %47 : vector<2x1xi1>, vector<2x1xf32>
    %c0_27 = arith.constant 0 : index
    %c1_28 = arith.constant 1 : index
    %50 = vector.load %arg7[%c0_27, %c1_28] : memref<2x2xf32, #tpu.memory_space<vmem>>, vector<2x1xf32>
    tpu.vector_store %arg7[%c0_27, %c1_28], %49 {strides = array<i32>} : memref<2x2xf32, #tpu.memory_space<vmem>>, vector<2x1xf32>,
    return
  }
  func.func @transform_0(%arg0: i32) -> (i32, i32) {
    %c0_i32 = arith.constant 0 : i32
    %c0_i32_0 = arith.constant 0 : i32
    return %arg0, %c0_i32 : i32, i32
  }
  func.func @transform_1(%arg0: i32) -> (i32, i32) {
    %c0_i32 = arith.constant 0 : i32
    %c0_i32_0 = arith.constant 0 : i32
    return %arg0, %c0_i32 : i32, i32
  }
  func.func @transform_2(%arg0: i32) -> (i32, i32, i32, i32) {
    %c1_i32 = arith.constant 1 : i32
    %c0_i32 = arith.constant 0 : i32
    %c0_i32_0 = arith.constant 0 : i32
    %c0_i32_1 = arith.constant 0 : i32
    return %arg0, %c1_i32, %c0_i32, %c0_i32_0 : i32, i32, i32, i32
  }
  func.func @transform_3(%arg0: i32) -> (i32, i32) {
    %c0_i32 = arith.constant 0 : i32
    %c0_i32_0 = arith.constant 0 : i32
    %c0_i32_1 = arith.constant 0 : i32
    return %c0_i32, %c0_i32_0 : i32, i32
  }
  func.func @transform_4(%arg0: i32) -> (i32, i32) {
    %c0_i32 = arith.constant 0 : i32
    %c0_i32_0 = arith.constant 0 : i32
    %c0_i32_1 = arith.constant 0 : i32
    return %c0_i32, %c0_i32_0 : i32, i32
  }
  func.func @transform_5(%arg0: i32) -> (i32, i32) {
    %c0_i32 = arith.constant 0 : i32
    %c0_i32_0 = arith.constant 0 : i32
    %c0_i32_1 = arith.constant 0 : i32
    return %c0_i32, %c0_i32_0 : i32, i32
  }
  func.func @transform_6(%arg0: i32) -> (i32, i32) {
    %c0_i32 = arith.constant 0 : i32
    %c0_i32_0 = arith.constant 0 : i32
    return %arg0, %c0_i32 : i32, i32
  }
}

</mosaic_0001>

<bundles_post_ra>
// kernel: qnetwork_forward.1
= control target key start
LH: loop header
LB: loop body
LE: loop exit
PB: predicated region body
PF: predicated region fallthrough
CT: control target
= control target key end

     0   :  { %v75_v27 = vlaneseq  ;;  %v1508_v28 = vmov 1966171168   ;;  %vm572_vm0 = vcmask 1046528   ;;  %vm568_vm1 = vcmask 637952   ;;  %s1959_s0 = inlined_call_operand.vmem [shape: bf16[2,462], index: 0, kind: input, shape index: {}]   ;;  %s1960_s1 = inlined_call_operand.vmem [shape: bf16[2,462], index: 1, kind: input, shape index: {}]   ;;  %s1961_s2 = inlined_call_operand.vmem [shape: f32[2,2,8,4], index: 2, kind: input, shape index: {}]   ;;  %s1962_s3 = inlined_call_operand.vmem [shape: bf16[462,256], index: 3, kind: input, shape index: {}]   ;;  %s1963_s4 = inlined_call_operand.vmem [shape: bf16[462,256], index: 4, kind: input, shape index: {}]   ;;  %s1964_s5 = inlined_call_operand.vmem [shape: f32[2,256], index: 5, kind: input, shape index: {}]   ;;  %s1965_s6 = inlined_call_operand.hbm [shape: f32[2,2], index: 6, kind: output, shape index: {}]  }
   0x1   :  { %v1306_v0 = vld [vmem:[%s1963_s4 + $0x74] ss:$8 sps:$4 sm:$0xff]   ;;  %v1310_v2 = vld [vmem:[%s1963_s4 + $0x70] ss:$8 sps:$4 sm:$0xff]   ;;  %v1312_v4 = vld [vmem:[%s1963_s4 + $0x64] ss:$8 sps:$4 sm:$0xff]   ;;  %v254_v29 = vunpack.c.l.s4 %v1508_v28 }
   0x2   :  { %v1308_v1 = vld [vmem:[%s1963_s4 + $0x174] ss:$8 sps:$4 sm:$0xff]   ;;  %579 = vmatprep.subr.bf16.mxu0 %v1306_v0  ;;  %v1311_v3 = vld [vmem:[%s1963_s4 + $0x170] ss:$8 sps:$4 sm:$0xff]   ;;  %v1314_v5 = vld [vmem:[%s1963_s4 + $0x164] ss:$8 sps:$4 sm:$0xff]  }
   0x3   :  { %620 = vmatprep.subr.bf16.mxu1 %v1308_v1  ;;  %580 = vmatpush1.bf16.msra.mxu0 %v1310_v2  ;;  %v1316_v6 = vld [vmem:[%s1963_s4 + $0x60] ss:$8 sps:$4 sm:$0xff]   ;;  %v1318_v8 = vld [vmem:[%s1963_s4 + $0x54] ss:$8 sps:$4 sm:$0xff]   ;;  %v1322_v10 = vld [vmem:[%s1963_s4 + $0x50] ss:$8 sps:$4 sm:$0xff]   ;;  %v255_v36 = vunpack.c.0.s8 %v254_v29 }
   0x4   :  { %621 = vmatpush1.bf16.msra.mxu1 %v1311_v3  ;;  %581 = vmatprep.subr.bf16.mxu0 %v1312_v4  ;;  %v1317_v7 = vld [vmem:[%s1963_s4 + $0x160] ss:$8 sps:$4 sm:$0xff]   ;;  %v1320_v9 = vld [vmem:[%s1963_s4 + $0x154] ss:$8 sps:$4 sm:$0xff]   ;;  %v1323_v11 = vld [vmem:[%s1963_s4 + $0x150] ss:$8 sps:$4 sm:$0xff]  }
   0x5   :  { %622 = vmatprep.subr.bf16.mxu1 %v1314_v5  ;;  %v1324_v12 = vld [vmem:[%s1963_s4 + $0x44] ss:$8 sps:$4 sm:$0xff]   ;;  %v1328_v14 = vld [vmem:[%s1963_s4 + $0x40] ss:$8 sps:$4 sm:$0xff]   ;;  %v1330_v16 = vld [vmem:[%s1963_s4 + $0x34] ss:$8 sps:$4 sm:$0xff]  }
   0x6   :  { %v1326_v13 = vld [vmem:[%s1963_s4 + $0x144] ss:$8 sps:$4 sm:$0xff]   ;;  %v1329_v15 = vld [vmem:[%s1963_s4 + $0x140] ss:$8 sps:$4 sm:$0xff]   ;;  %v1332_v17 = vld [vmem:[%s1963_s4 + $0x134] ss:$8 sps:$4 sm:$0xff]  }
   0x7   :  { %582 = vmatpush1.bf16.msra.mxu0 %v1316_v6  ;;  %v1334_v18 = vld [vmem:[%s1963_s4 + $0x30] ss:$8 sps:$4 sm:$0xff]   ;;  %v1336_v20 = vld [vmem:[%s1963_s4 + $0x24] ss:$8 sps:$4 sm:$0xff]   ;;  %v1340_v22 = vld [vmem:[%s1963_s4 + $0x20] ss:$8 sps:$4 sm:$0xff]  }
   0x8   :  { %623 = vmatpush1.bf16.msra.mxu1 %v1317_v7  ;;  %583 = vmatprep.subr.bf16.mxu0 %v1318_v8  ;;  %v1335_v19 = vld [vmem:[%s1963_s4 + $0x130] ss:$8 sps:$4 sm:$0xff]   ;;  %v1338_v21 = vld [vmem:[%s1963_s4 + $0x124] ss:$8 sps:$4 sm:$0xff]   ;;  %v1341_v23 = vld [vmem:[%s1963_s4 + $0x120] ss:$8 sps:$4 sm:$0xff]  }
   0x9   :  { %624 = vmatprep.subr.bf16.mxu1 %v1320_v9  ;;  %v1342_v24 = vld [vmem:[%s1963_s4 + $0x14] ss:$8 sps:$4 sm:$0xff]   ;;  %v1346_v26 = vld [vmem:[%s1963_s4 + $0x10] ss:$8 sps:$4 sm:$0xff]   ;;  %v1348_v31 = vld [vmem:[%s1963_s4 + $0x4] ss:$8 sps:$4 sm:$0xff]  }
   0xa   :  { %v1344_v25 = vld [vmem:[%s1963_s4 + $0x114] ss:$8 sps:$4 sm:$0xff]   ;;  %v1347_v30 = vld [vmem:[%s1963_s4 + $0x110] ss:$8 sps:$4 sm:$0xff]   ;;  %v1350_v32 = vld [vmem:[%s1963_s4 + $0x104] ss:$8 sps:$4 sm:$0xff]  }
   0xb   :  { %584 = vmatpush1.bf16.msra.mxu0 %v1322_v10  ;;  %v1352_v33 = vld [vmem:[%s1963_s4] ss:$8 sps:$4 sm:$0xff]   ;;  %v1643_v35 = vshrl.u32 %v75_v27, 7  ;;  %v1354_v37 = vld [vmem:[%s1963_s4 + $0xf4] ss:$8 sps:$4 sm:$0xff]   ;;  %vm1127_vm2 = vcmask 31744  }
   0xc   :  { %625 = vmatpush1.bf16.msra.mxu1 %v1323_v11  ;;  %585 = vmatprep.subr.bf16.mxu0 %v1324_v12  ;;  %v1353_v34 = vld [vmem:[%s1963_s4 + $0x100] ss:$8 sps:$4 sm:$0xff]   ;;  %v1356_v38 = vld [vmem:[%s1963_s4 + $0x1c4] ss:$8 sps:$4 sm:$0x7f]  }
   0xd   :  { %626 = vmatprep.subr.bf16.mxu1 %v1326_v13  ;;  %v1359_v39 = vld [vmem:[%s1963_s4 + $0x1c0] ss:$8 sps:$4 sm:$0x7f]   ;;  %v1358_v40 = vld [vmem:[%s1963_s4 + $0xf0] ss:$8 sps:$4 sm:$0xff]   ;;  %v1658_v41 = vsub.s32 %v255_v36, %v1643_v35 }
   0xe   :  { %v1360_v42 = vld [vmem:[%s1963_s4 + $0xe4] ss:$8 sps:$4 sm:$0xff]   ;;  %v574_v43 = vsel %vm572_vm0, %v1359_v39, 0  ;;  %v1362_v44 = vld [vmem:[%s1963_s4 + $0x1b4] ss:$8 sps:$4 sm:$0xff]  }
   0xf   :  { %586 = vmatpush1.bf16.msra.mxu0 %v1328_v14  ;;  %v1671_v45 = vld [vmem:[%s1960_s1] sm:$0xf]  ;;  %v1365_v48 = vld [vmem:[%s1963_s4 + $0x1b0] ss:$8 sps:$4 sm:$0xff]   ;;  %v1366_v49 = vld [vmem:[%s1963_s4 + $0xd4] ss:$8 sps:$4 sm:$0xff]  }
  0x10   :  { %627 = vmatpush1.bf16.msra.mxu1 %v1329_v15  ;;  %587 = vmatprep.subr.bf16.mxu0 %v1330_v16  ;;  %v1364_v46 = vld [vmem:[%s1963_s4 + $0xe0] ss:$8 sps:$4 sm:$0xff]   ;;  %v259_v47 = vrot.slane %v1671_v45, %v1658_v41  ;;  %v1368_v50 = vld [vmem:[%s1963_s4 + $0x1a4] ss:$8 sps:$4 sm:$0xff]   ;;  %v1370_v52 = vld [vmem:[%s1963_s4 + $0xd0] ss:$8 sps:$4 sm:$0xff]  }
  0x11   :  { %628 = vmatprep.subr.bf16.mxu1 %v1332_v17  ;;  %v1371_v53 = vld [vmem:[%s1963_s4 + $0x1a0] ss:$8 sps:$4 sm:$0xff]   ;;  %v1372_v55 = vld [vmem:[%s1963_s4 + $0xc4] ss:$8 sps:$4 sm:$0xff]   ;;  %v1374_v56 = vld [vmem:[%s1963_s4 + $0x194] ss:$8 sps:$4 sm:$0xff]  }
  0x12   :  { %v260_v51 = vcombine.high %v259_v47, %v259_v47  ;;  %v1376_v58 = vld [vmem:[%s1963_s4 + $0xc0] ss:$8 sps:$4 sm:$0xff]   ;;  %v1377_v59 = vld [vmem:[%s1963_s4 + $0x190] ss:$8 sps:$4 sm:$0xff]   ;;  %v1378_v60 = vld [vmem:[%s1963_s4 + $0xb4] ss:$8 sps:$4 sm:$0xff]   ;;  %v267_v63 = vrot.slane %v259_v47, %v1658_v41 }
  0x13   :  { %588 = vmatpush1.bf16.msra.mxu0 %v1334_v18  ;;  %v1380_v61 = vld [vmem:[%s1963_s4 + $0x184] ss:$8 sps:$4 sm:$0xff]   ;;  %v1382_v62 = vld [vmem:[%s1963_s4 + $0xb0] ss:$8 sps:$4 sm:$0xff]   ;;  %v1383_v0 = vld [vmem:[%s1963_s4 + $0x180] ss:$8 sps:$4 sm:$0xff]  }
  0x14   :  { %629 = vmatpush1.bf16.msra.mxu1 %v1335_v19  ;;  %589 = vmatprep.subr.bf16.mxu0 %v1336_v20  ;;  %v274_v54 = vrot.slane %v260_v51, %v1658_v41  ;;  %v1384_v1 = vld [vmem:[%s1963_s4 + $0xa4] ss:$8 sps:$4 sm:$0xff]   ;;  %v1388_v2 = vld [vmem:[%s1962_s3 + $0x74] ss:$8 sps:$4 sm:$0xff]   ;;  %v275_v3 = vcombine.high %v267_v63, %v267_v63  ;;  %v1386_v4 = vld [vmem:[%s1962_s3 + $0x70] ss:$8 sps:$4 sm:$0xff]  }
  0x15   :  { %630 = vmatprep.subr.bf16.mxu1 %v1338_v21  ;;  %v1389_v5 = vld [vmem:[%s1963_s4 + $0xa0] ss:$8 sps:$4 sm:$0xff]   ;;  %v1390_v6 = vld [vmem:[%s1963_s4 + $0x94] ss:$8 sps:$4 sm:$0xff]   ;;  %v1394_v7 = vld [vmem:[%s1962_s3 + $0x64] ss:$8 sps:$4 sm:$0xff]  }
  0x16   :  { %v276_v57 = vcombine.high %v274_v54, %v274_v54  ;;  %611 = vmatprep.mubr.bf16.mxu0 %v274_v54  ;;  %v1392_v8 = vld [vmem:[%s1962_s3 + $0x60] ss:$8 sps:$4 sm:$0xff]   ;;  %v1395_v9 = vld [vmem:[%s1963_s4 + $0x90] ss:$8 sps:$4 sm:$0xff]   ;;  %v1396_v10 = vld [vmem:[%s1963_s4 + $0x84] ss:$8 sps:$4 sm:$0xff]  }
  0x17   :  { %590 = vmatpush1.bf16.msra.mxu0 %v1340_v22  ;;  %v1400_v11 = vld [vmem:[%s1962_s3 + $0x54] ss:$8 sps:$4 sm:$0xff]   ;;  %v1398_v12 = vld [vmem:[%s1962_s3 + $0x50] ss:$8 sps:$4 sm:$0xff]   ;;  %v1401_v13 = vld [vmem:[%s1963_s4 + $0x80] ss:$8 sps:$4 sm:$0xff]   ;;  %v68_v22 = vunpack.c.l.bf16 %v1671_v45 }
  0x18   :  { %631 = vmatpush1.bf16.msra.mxu1 %v1341_v23  ;;  %591 = vmatprep.subr.bf16.mxu0 %v1342_v24  ;;  %v1404_v14 = vld [vmem:[%s1962_s3 + $0x44] ss:$8 sps:$4 sm:$0xff]   ;;  %v1407_v15 = vld [vmem:[%s1962_s3 + $0x174] ss:$8 sps:$4 sm:$0xff]   ;;  %v1402_v16 = vld [vmem:[%s1962_s3 + $0x40] ss:$8 sps:$4 sm:$0xff]  }
  0x19   :  { %632 = vmatprep.subr.bf16.mxu1 %v1344_v25  ;;  %1241 = vmatprep.mubr.msk.bf16.mxu1 %vm568_vm1, %v276_v57  ;;  %v1405_v17 = vld [vmem:[%s1962_s3 + $0x170] ss:$8 sps:$4 sm:$0xff]   ;;  %v1410_v18 = vld [vmem:[%s1962_s3 + $0x34] ss:$8 sps:$4 sm:$0xff]   ;;  %v1413_v19 = vld [vmem:[%s1962_s3 + $0x164] ss:$8 sps:$4 sm:$0xff]   ;;  %v103_v29 = vmul.f32 %v68_v22, %v68_v22 }
  0x1a   :  { %v1509_v20 = vmov 1983009808   ;;  %v1408_v23 = vld [vmem:[%s1962_s3 + $0x30] ss:$8 sps:$4 sm:$0xff]   ;;  %v1411_v24 = vld [vmem:[%s1962_s3 + $0x160] ss:$8 sps:$4 sm:$0xff]  }
  0x1b   :  { %592 = vmatpush1.bf16.msra.mxu0 %v1346_v26  ;;  %v73_v21 = vunpack.c.l.s4 %v1509_v20  ;;  %v1416_v25 = vld [vmem:[%s1962_s3 + $0x24] ss:$8 sps:$4 sm:$0xff]   ;;  %v1419_v26 = vld [vmem:[%s1962_s3 + $0x154] ss:$8 sps:$4 sm:$0xff]   ;;  %v1420_v36 = vld [vmem:[%s1962_s3 + $0x10] ss:$8 sps:$4 sm:$0xff]  }
  0x1c   :  { %633 = vmatpush1.bf16.msra.mxu1 %v1347_v30  ;;  %593 = vmatprep.subr.bf16.mxu0 %v1348_v31  ;;  %v1414_v30 = vld [vmem:[%s1962_s3 + $0x20] ss:$8 sps:$4 sm:$0xff]   ;;  %v1417_v31 = vld [vmem:[%s1962_s3 + $0x150] ss:$8 sps:$4 sm:$0xff]   ;;  %v1428_v39 = vld [vmem:[%s1962_s3 + $0x4] ss:$8 sps:$4 sm:$0xff]  }
  0x1d   :  { %634 = vmatprep.subr.bf16.mxu1 %v1350_v32  ;;  %v74_v28 = vunpack.c.0.s8 %v73_v21  ;;  %v1422_v32 = vld [vmem:[%s1962_s3 + $0x14] ss:$8 sps:$4 sm:$0xff]   ;;  %v1180_v45 = vld [vmem:[%s1961_s2 + $0x8] sm:$0xff] }
  0x1f   :  { %594 = vmatpush1.bf16.msra.mxu0 %v1352_v33  ;;  %v1425_v33 = vld [vmem:[%s1962_s3 + $0x144] ss:$8 sps:$4 sm:$0xff]  }
  0x20   :  { %635 = vmatpush1.bf16.msra.mxu1 %v1353_v34  ;;  %595 = vmatprep.subr.bf16.mxu0 %v1354_v37  ;;  %v77_v34 = vsub.s32 %v74_v28, %v1643_v35 }
  0x21   :  { %1240 = vmatprep.subr.msk.bf16.mxu1 %vm572_vm0, %v1356_v38  ;;  %v1423_v38 = vld [vmem:[%s1962_s3 + $0x140] ss:$8 sps:$4 sm:$0xff]  }
  0x22   :  { %v112_v37 = vrot.slane %v103_v29, %v77_v34 }
  0x23   :  { %596 = vmatpush2.bf16.msra.mxu0 %v1358_v40  ;;  %v1431_v40 = vld [vmem:[%s1962_s3 + $0x134] ss:$8 sps:$4 sm:$0xff]  }
  0x24   :  { %643 = vmatpush2.bf16.msra.mxu1 %v574_v43  ;;  %597 = vmatprep.subr.bf16.mxu0 %v1360_v42  ;;  %v65_v42 = vld [vmem:[%s1959_s0] sm:$0xf] }
  0x25   :  { %644 = vmatprep.subr.bf16.mxu1 %v1362_v44  ;;  %v1816_v43 = vrot.slane %v65_v42, %v1658_v41  ;;  %v67_v44 = vunpack.c.l.bf16 %v65_v42 }
  0x27   :  { %598 = vmatpush2.bf16.msra.mxu0 %v1364_v46  ;;  %v1181_v46 = vld [vmem:[%s1961_s2 + $0x18] sm:$0xff] }
  0x28   :  { %645 = vmatpush2.bf16.msra.mxu1 %v1365_v48  ;;  %599 = vmatprep.subr.bf16.mxu0 %v1366_v49 }
  0x29   :  { %646 = vmatprep.subr.bf16.mxu1 %v1368_v50 }
  0x2b   :  { %600 = vmatpush2.bf16.msra.mxu0 %v1370_v52 }
  0x2c   :  { %647 = vmatpush2.bf16.msra.mxu1 %v1371_v53  ;;  %601 = vmatprep.subr.bf16.mxu0 %v1372_v55 }
  0x2d   :  { %648 = vmatprep.subr.bf16.mxu1 %v1374_v56 }
  0x2f   :  { %602 = vmatpush2.bf16.msra.mxu0 %v1376_v58 }
  0x30   :  { %649 = vmatpush2.bf16.msra.mxu1 %v1377_v59  ;;  %603 = vmatprep.subr.bf16.mxu0 %v1378_v60 }
  0x31   :  { %650 = vmatprep.subr.bf16.mxu1 %v1380_v61 }
  0x33   :  { %604 = vmatpush2.bf16.msra.mxu0 %v1382_v62 }
  0x34   :  { %651 = vmatpush2.bf16.msra.mxu1 %v1383_v0  ;;  %605 = vmatprep.subr.bf16.mxu0 %v1384_v1 }
  0x35   :  { %986 = vmatprep.subr.bf16.mxu1 %v1388_v2 }
  0x37   :  { %653 = vmatmul.mubr.bf16.vlgmr.msra.gmra.mxu1 %v275_v3  ;;  %606 = vmatpush2.bf16.msra.mxu0 %v1389_v5 }
  0x38   :  { %987 = vmatpush1.bf16.msra.mxu1 %v1386_v4  ;;  %607 = vmatprep.subr.bf16.mxu0 %v1390_v6 }
  0x39   :  { %988 = vmatprep.subr.bf16.mxu1 %v1394_v7 }
  0x3b   :  { %608 = vmatpush2.bf16.msra.mxu0 %v1395_v9 }
  0x3c   :  { %989 = vmatpush1.bf16.msra.mxu1 %v1392_v8  ;;  %609 = vmatprep.subr.bf16.mxu0 %v1396_v10 }
  0x3d   :  { %990 = vmatprep.subr.bf16.mxu1 %v1400_v11 }
  0x3f   :  { %610 = vmatpush2.bf16.msra.mxu0 %v1401_v13 }
  0x40   :  { %991 = vmatpush1.bf16.msra.mxu1 %v1398_v12  ;;  %1027 = vmatprep.subr.bf16.mxu0 %v1407_v15 }
  0x41   :  { %992 = vmatprep.subr.bf16.mxu1 %v1404_v14 }
  0x42   :  { %612 = vmatmul.mubr.bf16.vlgmr.msra.gmra.mxu0 %v267_v63 }
  0x43   :  { %1028 = vmatpush1.bf16.msra.mxu0 %v1405_v17 }
  0x44   :  { %993 = vmatpush1.bf16.msra.mxu1 %v1402_v16  ;;  %1029 = vmatprep.subr.bf16.mxu0 %v1413_v19 }
  0x45   :  { %994 = vmatprep.subr.bf16.mxu1 %v1410_v18 }
  0x47   :  { %1030 = vmatpush1.bf16.msra.mxu0 %v1411_v24 }
  0x48   :  { %995 = vmatpush1.bf16.msra.mxu1 %v1408_v23  ;;  %1031 = vmatprep.subr.bf16.mxu0 %v1419_v26 }
  0x49   :  { %996 = vmatprep.subr.bf16.mxu1 %v1416_v25 }
  0x4b   :  { %1032 = vmatpush1.bf16.msra.mxu0 %v1417_v31 }
  0x4c   :  { %997 = vmatpush1.bf16.msra.mxu1 %v1414_v30  ;;  %1033 = vmatprep.subr.bf16.mxu0 %v1425_v33 }
  0x4d   :  { %998 = vmatprep.subr.bf16.mxu1 %v1422_v32 }
  0x4e   :  { %11 = vsyncpa [#allocation4], 0  ;;  %v105_v47 = vcombine.high %v103_v29, %v103_v29  ;;  %v120_v48 = vcombine.high %v112_v37, %v112_v37  ;;  %v1125_v49 = vand.u32 2147483647, %v1180_v45  ;;  %v1126_v50 = vand.u32 2147483647, %v1181_v46 }
  0x4f   :  { %1034 = vmatpush1.bf16.msra.mxu0 %v1423_v38  ;;  %v1426_v51 = vld [vmem:[%s1962_s3] ss:$8 sps:$4 sm:$0xff]   ;;  %v1429_v52 = vld [vmem:[%s1962_s3 + $0x130] ss:$8 sps:$4 sm:$0xff]   ;;  %v669_v53 = vcombine.high %v1816_v43, %v1816_v43  ;;  %v69_v54 = vmul.f32 %v67_v44, %v67_v44  ;;  %v1434_v55 = vld [vmem:[%s1962_s3 + $0xf4] ss:$8 sps:$4 sm:$0xff]  }
  0x50   :  { %999 = vmatpush1.bf16.msra.mxu1 %v1420_v36  ;;  %1035 = vmatprep.subr.bf16.mxu0 %v1431_v40  ;;  %v1437_v56 = vld [vmem:[%s1962_s3 + $0x124] ss:$8 sps:$4 sm:$0xff]   ;;  %vm92_vm3 = vcmask 1041408   ;;  %v1128_v57 = vsel %vm1127_vm2, %v1125_v49, -inf  ;;  %v119_v61 = vrot.slane %v105_v47, %v77_v34  ;;  %v1131_v0 = vsel %vm1127_vm2, %v1126_v50, -inf }
  0x51   :  { %1000 = vmatprep.subr.bf16.mxu1 %v1428_v39  ;;  %v683_v58 = vrot.slane %v669_v53, %v1658_v41  ;;  %v71_v59 = vcombine.high %v69_v54, %v69_v54  ;;  %v78_v60 = vrot.slane %v69_v54, %v77_v34  ;;  %1129 = vmax.xlane.f32.xlu1 %v1128_v57  ;;  %v126_v62 = vsel %vm92_vm3, %v112_v37, 0.0  ;;  %v1432_v1 = vld [vmem:[%s1962_s3 + $0xf0] ss:$8 sps:$4 sm:$0xff]   ;;  %v1435_v2 = vld [vmem:[%s1962_s3 + $0x120] ss:$8 sps:$4 sm:$0xff]  }
  0x52   :  { %v127_v63 = vsel %vm92_vm3, %v120_v48, 0.0  ;;  %v1440_v7 = vld [vmem:[%s1962_s3 + $0xe4] ss:$8 sps:$4 sm:$0xff]   ;;  %v1443_v8 = vld [vmem:[%s1962_s3 + $0x114] ss:$8 sps:$4 sm:$0xff]   ;;  %vm98_vm4 = vcmask 631808   ;;  %v121_v14 = vcombine.high %v119_v61, %v119_v61 }
  0x53   :  { %1036 = vmatpush1.bf16.msra.mxu0 %v1429_v52  ;;  %v685_v3 = vcombine.high %v683_v58, %v683_v58  ;;  %v85_v4 = vrot.slane %v71_v59, %v77_v34  ;;  %v86_v5 = vcombine.high %v78_v60, %v78_v60  ;;  %v93_v6 = vsel %vm92_vm3, %v78_v60, 0.0  ;;  %1018 = vmatprep.mubr.bf16.mxu1 %v683_v58  ;;  %v1438_v16 = vld [vmem:[%s1962_s3 + $0xe0] ss:$8 sps:$4 sm:$0xff]   ;;  %v1441_v17 = vld [vmem:[%s1962_s3 + $0x110] ss:$8 sps:$4 sm:$0xff]  }
  0x54   :  { %1001 = vmatpush1.bf16.msra.mxu1 %v1426_v51  ;;  %1037 = vmatprep.subr.bf16.mxu0 %v1437_v56  ;;  %v128_v12 = vadd.f32 %v127_v63, %v126_v62  ;;  %v129_v15 = vsel %vm92_vm3, %v119_v61, 0.0  ;;  %v1446_v19 = vld [vmem:[%s1962_s3 + $0xd4] ss:$8 sps:$4 sm:$0xff]   ;;  %v1449_v20 = vld [vmem:[%s1962_s3 + $0x104] ss:$8 sps:$4 sm:$0xff]   ;;  %v131_v24 = vsel %vm98_vm4, %v121_v14, 0.0  ;;  %v676_v51 = vrot.slane %v1816_v43, %v1658_v41 }
  0x55   :  { %1002 = vmatprep.subr.bf16.mxu1 %v1434_v55  ;;  %1301 = vmatprep.mubr.msk.bf16.mxu0 %vm568_vm1, %v685_v3  ;;  %v87_v9 = vcombine.high %v85_v4, %v85_v4  ;;  %v94_v10 = vsel %vm92_vm3, %v86_v5, 0.0  ;;  %v96_v11 = vsel %vm92_vm3, %v85_v4, 0.0  ;;  %v1444_v25 = vld [vmem:[%s1962_s3 + $0xd0] ss:$8 sps:$4 sm:$0xff]   ;;  %v1447_v26 = vld [vmem:[%s1962_s3 + $0x100] ss:$8 sps:$4 sm:$0xff]  }
  0x56   :  { %v95_v13 = vadd.f32 %v94_v10, %v93_v6  ;;  %1132 = vmax.xlane.f32.xlu1 %v1131_v0  ;;  %v130_v22 = vadd.f32 %v129_v15, %v128_v12  ;;  %v1452_v28 = vld [vmem:[%s1962_s3 + $0xc4] ss:$8 sps:$4 sm:$0xff]   ;;  %v1455_v30 = vld [vmem:[%s1962_s3 + $0x1c0] ss:$8 sps:$4 sm:$0x7f]   ;;  %v684_v54 = vcombine.high %v676_v51, %v676_v51  ;;  %v1074_v62 = vsub.s32 0, %v1643_v35 }
  0x57   :  { %1038 = vmatpush1.bf16.msra.mxu0 %v1435_v2  ;;  %v99_v18 = vsel %vm98_vm4, %v87_v9, 0.0  ;;  %v1453_v29 = vld [vmem:[%s1962_s3 + $0x1c4] ss:$8 sps:$4 sm:$0x7f]   ;;  %v1450_v32 = vld [vmem:[%s1962_s3 + $0xc0] ss:$8 sps:$4 sm:$0xff]  }
  0x58   :  { %1003 = vmatpush2.bf16.msra.mxu1 %v1432_v1  ;;  %1039 = vmatprep.subr.bf16.mxu0 %v1443_v8  ;;  %v97_v21 = vadd.f32 %v96_v11, %v95_v13  ;;  %v132_v31 = vadd.f32 %v131_v24, %v130_v22  ;;  %v981_v33 = vsel %vm572_vm0, %v1455_v30, 0  ;;  %v1458_v34 = vld [vmem:[%s1962_s3 + $0xb4] ss:$8 sps:$4 sm:$0xff]   ;;  %v1456_v37 = vld [vmem:[%s1962_s3 + $0xb0] ss:$8 sps:$4 sm:$0xff]   ;;  %v1078_v1 = vsub.s32 1, %v1643_v35 }
  0x59   :  { %1004 = vmatprep.subr.bf16.mxu1 %v1440_v7  ;;  %v1461_v36 = vld [vmem:[%s1962_s3 + $0x1b4] ss:$8 sps:$4 sm:$0xff]   ;;  %v1459_v38 = vld [vmem:[%s1962_s3 + $0x1b0] ss:$8 sps:$4 sm:$0xff]   ;;  %v1464_v39 = vld [vmem:[%s1962_s3 + $0xa4] ss:$8 sps:$4 sm:$0xff]  }
  0x5a   :  { %v100_v23 = vadd.f32 %v99_v18, %v97_v21  ;;  %v1467_v40 = vld [vmem:[%s1962_s3 + $0x1a4] ss:$8 sps:$4 sm:$0xff]   ;;  %v1462_v42 = vld [vmem:[%s1962_s3 + $0xa0] ss:$8 sps:$4 sm:$0xff]   ;;  %v1470_v45 = vld [vmem:[%s1962_s3 + $0x94] ss:$8 sps:$4 sm:$0xff]  }
  0x5b   :  { %1040 = vmatpush1.bf16.msra.mxu0 %v1441_v17  ;;  %v1465_v44 = vld [vmem:[%s1962_s3 + $0x1a0] ss:$8 sps:$4 sm:$0xff]   ;;  %v1473_v46 = vld [vmem:[%s1962_s3 + $0x194] ss:$8 sps:$4 sm:$0xff]   ;;  %v1468_v47 = vld [vmem:[%s1962_s3 + $0x90] ss:$8 sps:$4 sm:$0xff]  }
  0x5c   :  { %1005 = vmatpush2.bf16.msra.mxu1 %v1438_v16  ;;  %1041 = vmatprep.subr.bf16.mxu0 %v1449_v20  ;;  %v1471_v48 = vld [vmem:[%s1962_s3 + $0x190] ss:$8 sps:$4 sm:$0xff]   ;;  %v1476_v49 = vld [vmem:[%s1962_s3 + $0x84] ss:$8 sps:$4 sm:$0xff]   ;;  %v1474_v52 = vld [vmem:[%s1962_s3 + $0x80] ss:$8 sps:$4 sm:$0xff]  }
  0x5d   :  { %1006 = vmatprep.subr.bf16.mxu1 %v1446_v19  ;;  %101 = vadd.xlane.f32.xlu0 %v100_v23  ;;  %v1479_v50 = vld [vmem:[%s1962_s3 + $0x184] ss:$8 sps:$4 sm:$0xff]   ;;  %v1477_v53 = vld [vmem:[%s1962_s3 + $0x180] ss:$8 sps:$4 sm:$0xff]   ;;  %vm1146_vm7 = vcmask 1041409   ;;  %vm1149_vm10 = vcmask 58368  }
  0x5e   :  { %v1068_v63 = vld [vmem:[%s1964_s5] ss:$2 sm:$0x3]  ;;  %vm1156_vm11 = vcmask 1024   ;;  %vm1160_vm13 = vcmask 9224  }
  0x5f   :  { %1042 = vmatpush1.bf16.msra.mxu0 %v1447_v26  ;;  %v1075_v3 = vrot.slane %v1068_v63, %v1074_v62  ;;  %v1079_v8 = vrot.slane %v1068_v63, %v1078_v1  ;;  %v1137_v26 = vand.u32 127, %v75_v27 }
  0x60   :  { %1007 = vmatpush2.bf16.msra.mxu1 %v1444_v25  ;;  %1300 = vmatprep.subr.msk.bf16.mxu0 %vm572_vm0, %v1453_v29 }
  0x61   :  { %1008 = vmatprep.subr.bf16.mxu1 %v1452_v28  ;;  %133 = vadd.xlane.f32.xlu0 %v132_v31  ;;  %v1302_v28 = vld [vmem:[%s1964_s5 + $0x1] ss:$2 sm:$0x3]  ;;  %v1140_v29 = vsub.s32 %v1137_v26, %v1643_v35  ;;  %s1510_s5 = smov [#allocation3]  }
  0x62   :  { %s1168_s8 = sshll.u32 %s1510_s5, 4  ;;  %s1169_s8 = int_to_ptr.vmem [resolvable:$true] %s1168_s8 }
  0x63   :  { %1050 = vmatpush2.bf16.msra.mxu0 %v981_v33  ;;  %v1106_v33 = vrot.slane %v1302_v28, %v1074_v62  ;;  %s1486_s1 = scalar_lea.vmem %s1169_s8, 32  ;;  %p1491_p1 = scmp.lt.s32.totalorder %s1169_s8, %s1169_s8 }
  0x64   :  { %1009 = vmatpush2.bf16.msra.mxu1 %v1450_v32  ;;  %1051 = vmatprep.subr.bf16.mxu0 %v1461_v36  ;;  %p1487_p0 = scmp.ne.s32.totalorder %s1169_s8, %s1486_s1  ;;  %p1492_p2 = scmp.lt.s32.totalorder %s1486_s1, %s1486_s1 }
  0x65   :  { %1010 = vmatprep.subr.bf16.mxu1 %v1458_v34  ;;  %v1110_v34 = vrot.slane %v1302_v28, %v1078_v1 }
  0x66   :  { %p1493_p3 = por %p1492_p2, %p1491_p1 }
  0x67   :  { %1052 = vmatpush2.bf16.msra.mxu0 %v1459_v38 }
  0x68   :  { %1011 = vmatpush2.bf16.msra.mxu1 %v1456_v37  ;;  %1053 = vmatprep.subr.bf16.mxu0 %v1467_v40  ;;  %p1494_p4 = pnand %p1493_p3, %p1487_p0 }
  0x69   :  { %1012 = vmatprep.subr.bf16.mxu1 %v1464_v39 }
  0x6b   :  { %1054 = vmatpush2.bf16.msra.mxu0 %v1465_v44 }
  0x6c   :  { %1013 = vmatpush2.bf16.msra.mxu1 %v1462_v42  ;;  %1055 = vmatprep.subr.bf16.mxu0 %v1473_v46 }
  0x6d   :  { %1014 = vmatprep.subr.bf16.mxu1 %v1470_v45 }
  0x6f   :  { %1056 = vmatpush2.bf16.msra.mxu0 %v1471_v48 }
  0x70   :  { %1015 = vmatpush2.bf16.msra.mxu1 %v1468_v47  ;;  %1057 = vmatprep.subr.bf16.mxu0 %v1479_v50 }
  0x71   :  { %1016 = vmatprep.subr.bf16.mxu1 %v1476_v49 }
  0x73   :  { %1058 = vmatpush2.bf16.msra.mxu0 %v1477_v53 }
  0x74   :  { %1017 = vmatpush2.bf16.msra.mxu1 %v1474_v52 }
  0x76   :  { %1060 = vmatmul.mubr.bf16.vlgmr.msra.gmra.mxu0 %v684_v54 }
  0x77   :  { %1019 = vmatmul.mubr.bf16.vlgmr.msra.gmra.mxu1 %v676_v51 }
  0xda   :  { %v1130_v25 = vpop.xlane.xlu1 %1129 }
  0xdb   :  { %v1141_v38 = vrot.slane %v1130_v25, %v1140_v29 }
  0xdf   :  { %v1133_v30 = vpop.xlane.xlu1 %1132 }
  0xe0   :  { %v1145_v39 = vrot.slane %v1133_v30, %v1140_v29 }
  0xe2   :  { %v1147_v47 = vsel %vm1146_vm7, %v1145_v39, %v1141_v38 }
  0xe3   :  { %v1150_v51 = vsel %vm1149_vm10, %v1147_v47, -inf }
  0xe6   :  { %v102_v61 = vpop.xlane.xlu0 %101 }
  0xea   :  { %v134_v0 = vpop.xlane.xlu0 %133 }
  0xeb   :  { %v135_v4 = vadd.f32 %v134_v0, %v102_v61 }
  0xed   :  { %v1082_v12 = vadd.f32 %v1075_v3, %v135_v4  ;;  %v1083_v17 = vadd.f32 %v1079_v8, %v135_v4 }
  0xf7   :  { %v654_v55 = vpop.f32.mrf.mxu1 }
  0xf9   :  { %v656_v56 = vpop.f32.mrf.mxu1 }
  0xfb   :  { %v658_v41 = vpop.f32.mrf.mxu1 }
  0xfd   :  { %v659_v43 = vpop.f32.mrf.mxu1 }
 0x102   :  { %v613_v57 = vpop.f32.mrf.mxu0 }
 0x103   :  { %v655_v2 = vadd.f32 %v654_v55, %v613_v57 }
 0x104   :  { %v615_v58 = vpop.f32.mrf.mxu0 }
 0x105   :  { %v657_v7 = vadd.f32 %v656_v56, %v615_v58 }
 0x106   :  { %v617_v59 = vpop.f32.mrf.mxu0 }
 0x108   :  { %v618_v60 = vpop.f32.mrf.mxu0 }
 0x136   :  { %v1061_v6 = vpop.f32.mrf.mxu0 }
 0x137   :  { %v1020_v5 = vpop.f32.mrf.mxu1 }
 0x138   :  { %v1021_v9 = vadd.f32 %v1020_v5, %v655_v2  ;;  %v1063_v11 = vpop.f32.mrf.mxu0 }
 0x139   :  { %v1022_v10 = vpop.f32.mrf.mxu1 }
 0x13a   :  { %v1062_v13 = vadd.f32 %v1061_v6, %v1021_v9  ;;  %v1023_v14 = vadd.f32 %v1022_v10, %v657_v7  ;;  %v1065_v16 = vpop.f32.mrf.mxu0 }
 0x13b   :  { %v1024_v15 = vpop.f32.mrf.mxu1 }
 0x13c   :  { %v1084_v18 = vadd.f32 %v1082_v12, %v1062_v13  ;;  %v1064_v19 = vadd.f32 %v1063_v11, %v1023_v14  ;;  %v1066_v21 = vpop.f32.mrf.mxu0 }
 0x13d   :  { %v1025_v20 = vpop.f32.mrf.mxu1 }
 0x13e   :  { %v1086_v22 = vmax.f32 %v1084_v18, 0.0  ;;  %v1085_v23 = vadd.f32 %v1083_v17, %v1064_v19 }
 0x140   :  { %1480 = vrsqrt.f32 %v1086_v22  ;;  %v1087_v24 = vmax.f32 %v1085_v23, 0.0  ;;  %vm1090_vm5 = vcmp.eq.f32.partialorder %v1086_v22, inf  ;;  %v1093_v37 = vand.u32 2147483648, %v1086_v22 }
 0x141   :  { %vm1092_vm6 = vcmp.eq.f32.partialorder %v1086_v22, 0.0 }
 0x142   :  { %1482 = vrsqrt.f32 %v1087_v24  ;;  %vm1097_vm8 = vcmp.eq.f32.partialorder %v1087_v24, inf  ;;  %v1100_v44 = vand.u32 2147483648, %v1087_v24  ;;  %vm1099_vm9 = vcmp.eq.f32.partialorder %v1087_v24, 0.0 }
 0x14d   :  { %v1481_v31 = vpop.eup %1480 }
 0x14e   :  { %v1089_v32 = vmul.f32 %v1481_v31, %v1086_v22 }
 0x14f   :  { %v1483_v36 = vpop.eup %1482 }
 0x150   :  { %v1091_v40 = vsel %vm1090_vm5, %v1086_v22, %v1089_v32  ;;  %v1096_v42 = vmul.f32 %v1483_v36, %v1087_v24 }
 0x151   :  { %v1094_v27 = vsel %vm1092_vm6, %v1093_v37, %v1091_v40 }
 0x152   :  { %v1113_v45 = vmul.f32 %v1106_v33, %v1094_v27  ;;  %v1098_v46 = vsel %vm1097_vm8, %v1087_v24, %v1096_v42 }
 0x153   :  { %v1101_v35 = vsel %vm1099_vm9, %v1100_v44, %v1098_v46 }
 0x154   :  { %v1115_v48 = vsel %vm92_vm3, %v1113_v45, 0.0  ;;  %v1114_v49 = vmul.f32 %v1110_v34, %v1101_v35 }
 0x155   :  { %1116 = vadd.xlane.f32.xlu0 %v1115_v48 }
 0x156   :  { %v1118_v50 = vsel %vm92_vm3, %v1114_v49, 0.0 }
 0x157   :  { %1119 = vadd.xlane.f32.xlu1 %v1118_v50 }
 0x159   :  { %1151 = vmax.xlane.f32.xlu0 %v1150_v51 }
 0x1de   :  { %v1117_v52 = vpop.xlane.xlu0 %1116 }
 0x1e0   :  { %v1120_v53 = vpop.xlane.xlu1 %1119 }
 0x1e1   :  { %v1121_v54 = vadd.f32 %v1120_v53, %v1117_v52 }
 0x1e2   :  { %v1152_v55 = vpop.xlane.xlu0 %1151 }
 0x1e3   :  { %1484 = vrcp.f32 %v1121_v54  ;;  %vm1153_vm12 = vcmp.eq.f32.partialorder %v1152_v55, 0.0 }
 0x1f0   :  { %v1485_v56 = vpop.eup %1484 }
 0x1f1   :  { %v1158_v41 = vmul.f32 %v1485_v56, %v1120_v53  ;;  %v1154_v43 = vmul.f32 %v1485_v56, %v1117_v52 }
 0x1f3   :  { %v1155_v57 = vsel %vm1153_vm12, 0.5, %v1154_v43  ;;  %v1159_v58 = vsel %vm1153_vm12, 0.5, %v1158_v41 }
 0x1f4   :  { %1157 = vst.msk [vmem:[#allocation3] sm:$0x3] %vm1156_vm11, %v1155_v57 }
 0x1f5   :  { %1161 = vst.msk [vmem:[#allocation3] sm:$0x3] %vm1160_vm13, %v1159_v58 }
 0x1f6   :  { %1497 = shalt.err (!%p1494_p4)
}
 0x1f7   :  { %1171 = dma.vmem_to_hbm [thread:$0]  %s1169_s8, 32, %s1965_s6, [#allocation4]  }
 0x1f8   :  { %1506 = dma.done.wait [#allocation4], 32  }
 0x1f9   :  { %1507 = vsyncadd [#allocation4], 4294967264 }
 0x1fa   :  { %1175 = vsyncpa [#allocation4], 1 }

</bundles_post_ra>
